<compile_context>
chip_gen: v7x
topology: tpu7x:2x2x1
jax: 0.10.0
libtpu: 0.0.40
codegen_flags: <defaults>
</compile_context>

<pallas_src>
import functools

import jax
import jax.numpy as jnp
from jax import lax
from jax.experimental import pallas as pl
from jax.experimental.pallas import tpu as pltpu


# ----------------------------------------------------------------------------
# Chip-aware VMEM budgeting
# ----------------------------------------------------------------------------
def _vmem_limit_bytes() -> int:
    """Scoped-VMEM limit derived from the chip's physical VMEM capacity."""
    try:
        cap = int(pltpu.get_tpu_info().vmem_capacity_bytes)
    except Exception:
        # Query unavailable -> assume the smallest (v7x-class, 64 MiB) chip.
        cap = 64 * 1024 * 1024
    # 3/4 of physical VMEM, capped at 96 MiB: 96 MiB on v5e/v6e, 48 MiB on v7x.
    return min((cap * 3) // 4, 96 * 1024 * 1024)


def _tile_target_bytes(vmem_limit: int, resident_bytes: int) -> int:
    """Target bytes for one x tile: double-buffered (in + out) tiles plus the
    resident params must fit under the scoped limit with headroom."""
    avail = max(vmem_limit - resident_bytes - (2 << 20), 2 << 20)
    # 2x in + 2x out buffers + slack -> /5; cap at 8 MiB (already ~roofline).
    return int(min(8 << 20, max(512 << 10, avail // 5)))


def _choose_lane_tile(hw: int, c: int, itemsize: int, tile_target: int) -> int:
    """Spatial (lane-dim) tile size: a multiple of 128 sized by bytes."""
    per_lane = max(1, c * itemsize)
    cap = max(128, (tile_target // per_lane) // 128 * 128)
    if hw <= cap:
        return hw                      # full extent is always a legal block dim
    t = cap                            # prefer an exact divisor (no partial tail)
    while t >= 128:
        if hw % t == 0:
            return t
        t -= 128
    return cap                         # ragged HW: Pallas masks the partial tail


def _choose_row_tile(rows: int, c: int, itemsize: int, tile_target: int) -> int:
    """Sublane-dim tile (rows of 128 lanes) for the small-C path."""
    per_row = max(1, c * 128 * itemsize)
    cap = max(8, (tile_target // per_row) // 8 * 8)
    if rows <= cap:
        return rows
    t = cap
    while t >= 8:
        if rows % t == 0:
            return t
        t -= 8
    return cap


# ----------------------------------------------------------------------------
# Kernels
# ----------------------------------------------------------------------------
def _gdn_mxu_kernel(x_ref, gamma_ref, beta_ref, o_ref, *, inverse: bool):
    # x_ref:     (1, C, thw)  tile (lane dim = spatial)
    # gamma_ref: (C, C)       resident, in the matmul dtype
    # beta_ref:  (C, 1)       resident, f32
    x = x_ref[0]                                        # (C, thw), input dtype
    xf = x.astype(jnp.float32)
    x2 = (xf * xf).astype(gamma_ref.dtype)              # square in f32, cast once
    # norm[i, p] = sum_j gamma[i, j] * x2[j, p]   (f32 accumulation on the MXU)
    norm = jnp.dot(gamma_ref[...], x2, preferred_element_type=jnp.float32)
    norm = norm + beta_ref[...]                         # broadcast (C,1) over lanes
    scale = jnp.sqrt(norm) if inverse else lax.rsqrt(norm)
    if x.dtype == jnp.bfloat16:
        # bf16 store path: one packed vreg per tile row instead of two f32 ones.
        o_ref[0] = (x * scale.astype(jnp.bfloat16)).astype(o_ref.dtype)
    else:
        o_ref[0] = (xf * scale).astype(o_ref.dtype)


def _gdn_vpu_kernel(x_ref, gamma_ref, beta_ref, o_ref, *, inverse: bool, c: int):
    # Small-C path: x_ref/o_ref (1, C, rt, 128) dense (8,128) tiles per channel;
    # gamma_ref (C, C) and beta_ref (C,) live in SMEM and are read as scalars.
    x = x_ref[0]                                        # (C, rt, 128), input dtype
    xf = x.astype(jnp.float32)
    x2 = xf * xf                                        # f32 squares
    for i in range(c):                                  # unrolled C^2 scalar*vector
        norm = gamma_ref[i, 0] * x2[0]
        for j in range(1, c):
            norm = norm + gamma_ref[i, j] * x2[j]
        norm = norm + beta_ref[i]
        scale = jnp.sqrt(norm) if inverse else lax.rsqrt(norm)
        if x.dtype == jnp.bfloat16:
            o_ref[0, i] = (x[i] * scale.astype(jnp.bfloat16)).astype(o_ref.dtype)
        else:
            o_ref[0, i] = (xf[i] * scale).astype(o_ref.dtype)


# ----------------------------------------------------------------------------
# Wrappers
# ----------------------------------------------------------------------------
def _gdn_mxu(x_flat, gamma, beta, *, inverse, matmul_dtype, vmem_limit):
    N, C, HW = x_flat.shape
    itemsize = jnp.dtype(x_flat.dtype).itemsize
    gamma_mat = gamma.astype(matmul_dtype)              # cast hoisted out of kernel
    beta_col = beta.astype(jnp.float32).reshape(C, 1)

    resident = 2 * (int(gamma_mat.size) * gamma_mat.dtype.itemsize + C * 4)
    tile_target = _tile_target_bytes(vmem_limit, resident)
    thw = _choose_lane_tile(HW, C, itemsize, tile_target)
    grid = (pl.cdiv(HW, thw), N)          # spatial axis first: v7x megacore shards it

    kernel = functools.partial(_gdn_mxu_kernel, inverse=inverse)
    return pl.pallas_call(
        kernel,
        out_shape=jax.ShapeDtypeStruct((N, C, HW), x_flat.dtype),
        grid_spec=pl.GridSpec(
            grid=grid,
            in_specs=[
                pl.BlockSpec((1, C, thw), lambda j, n: (n, 0, j)),   # x tile
                # gamma/beta block indices are constant -> fetched once, resident,
                # never re-DMA'd across grid steps.
                # TODO(synk): sweep pipeline_mode=pl.Buffered(1) here (reclaim the
                # second param buffer) and pl.Buffered(3) on x for v7x.
                pl.BlockSpec((C, C), lambda j, n: (0, 0)),
                pl.BlockSpec((C, 1), lambda j, n: (0, 0)),
            ],
            out_specs=pl.BlockSpec((1, C, thw), lambda j, n: (n, 0, j)),
        ),
        compiler_params=pltpu.CompilerParams(
            dimension_semantics=("parallel", "parallel"),
            vmem_limit_bytes=vmem_limit,
        ),
    )(x_flat, gamma_mat, beta_col)


def _gdn_vpu(x4, gamma, beta, *, inverse, vmem_limit):
    N, C, rows, _ = x4.shape
    itemsize = jnp.dtype(x4.dtype).itemsize
    tile_target = _tile_target_bytes(vmem_limit, resident_bytes=0)
    rt = _choose_row_tile(rows, C, itemsize, tile_target)
    grid = (pl.cdiv(rows, rt), N)         # spatial axis first for megacore sharding

    kernel = functools.partial(_gdn_vpu_kernel, inverse=inverse, c=C)
    return pl.pallas_call(
        kernel,
        out_shape=jax.ShapeDtypeStruct((N, C, rows, 128), x4.dtype),
        grid_spec=pl.GridSpec(
            grid=grid,
            in_specs=[
                pl.BlockSpec((1, C, rt, 128), lambda r, n: (n, 0, r, 0)),
                pl.BlockSpec(memory_space=pltpu.MemorySpace.SMEM),   # gamma scalars
                pl.BlockSpec(memory_space=pltpu.MemorySpace.SMEM),   # beta scalars
            ],
            out_specs=pl.BlockSpec((1, C, rt, 128), lambda r, n: (n, 0, r, 0)),
        ),
        compiler_params=pltpu.CompilerParams(
            dimension_semantics=("parallel", "parallel"),
            vmem_limit_bytes=vmem_limit,
        ),
    )(x4, gamma.astype(jnp.float32), beta.astype(jnp.float32))


def gdn_pallas(x_nchw, gamma, beta, *, inverse: bool = False, matmul_dtype=None):
    """GDN forward.  x_nchw: (N, C, H, W); gamma: (C, C); beta: (C,)."""
    N, C, H, W = x_nchw.shape
    HW = H * W
    itemsize = jnp.dtype(x_nchw.dtype).itemsize
    vmem_limit = _vmem_limit_bytes()

    # Small-C VPU path: below these channel counts the (C,C)@(C,thw) matmul is
    # >=50% sublane padding with a ~97%-idle MXU; do the C^2 scalar*vector sums
    # on dense (8,128) spatial tiles instead.
    small_c = 8 if itemsize >= 4 else 16
    if C < small_c and HW % 128 == 0:
        x4 = x_nchw.reshape(N, C, HW // 128, 128)        # pure reshape, no copy
        out = _gdn_vpu(x4, gamma, beta, inverse=inverse, vmem_limit=vmem_limit)
        return out.reshape(N, C, H, W)

    # MXU path.  `matmul_dtype` is the precision flag for large-C f32 inputs on
    # v5e (cast operands to bf16, f32 accumulation stays); default keeps f32.
    if matmul_dtype is None:
        matmul_dtype = jnp.bfloat16 if x_nchw.dtype == jnp.bfloat16 else jnp.float32
    x_flat = x_nchw.reshape(N, C, HW)                    # pure reshape, no transpose
    out = _gdn_mxu(x_flat, gamma, beta, inverse=inverse,
                   matmul_dtype=matmul_dtype, vmem_limit=vmem_limit)
    return out.reshape(N, C, H, W)


# ----------------------------------------------------------------------------
# Deterministic parameter construction mirroring NonNegativeParametrizer
# ----------------------------------------------------------------------------
def make_gdn_params(in_channels: int, beta_min: float = 1e-6,
                    gamma_init: float = 0.1,
                    reparam_offset: float = 2.0 ** -18):
    pedestal = reparam_offset ** 2
    beta_bound = (beta_min + pedestal) ** 0.5
    gamma_bound = pedestal ** 0.5

    # .init(): sqrt(max(x + pedestal, pedestal))
    beta_param = jnp.sqrt(jnp.maximum(
        jnp.ones((in_channels,), jnp.float32) + pedestal, pedestal))
    gamma_param = jnp.sqrt(jnp.maximum(
        gamma_init * jnp.eye(in_channels, dtype=jnp.float32) + pedestal, pedestal))

    # forward reparam: lower_bound(x)^2 - pedestal
    beta = jnp.maximum(beta_param, beta_bound) ** 2 - pedestal
    gamma = jnp.maximum(gamma_param, gamma_bound) ** 2 - pedestal
    return gamma, beta


# ----------------------------------------------------------------------------
# Pure-JAX reference (matches the PyTorch forward)
# ----------------------------------------------------------------------------
def gdn_ref(x_nchw, gamma, beta, inverse=False):
    x2 = x_nchw.astype(jnp.float32) ** 2
    norm = jnp.einsum("ncHW,oc->noHW", x2, gamma,
                      precision=jax.lax.Precision.HIGHEST)
    norm = norm + beta[None, :, None, None]
    scale = jnp.sqrt(norm) if inverse else lax.rsqrt(norm)
    return (x_nchw * scale).astype(x_nchw.dtype)


if __name__ == "__main__":
    # Path 1: small-C VPU path (the module's natural small demo config).
    N, C, H, W = 2, 4, 16, 16
    x = jax.random.normal(jax.random.PRNGKey(0), (N, C, H, W), dtype=jnp.float32)
    gamma, beta = make_gdn_params(C)
    out = jax.block_until_ready(gdn_pallas(x, gamma, beta, inverse=False))
    ref = gdn_ref(x, gamma, beta, inverse=False)
    assert out.shape == (N, C, H, W)
    assert jnp.allclose(out, ref, atol=1e-5, rtol=1e-5), "small-C path mismatch"

    # Path 2: MXU path (C >= 8), inverse (IGDN) variant.  Looser tolerance to
    # accommodate multi-pass MXU f32 rounding vs the f32 reference einsum.
    C2 = 16
    x2 = jax.random.normal(jax.random.PRNGKey(1), (1, C2, 16, 16), dtype=jnp.float32)
    gamma2, beta2 = make_gdn_params(C2)
    out2 = jax.block_until_ready(gdn_pallas(x2, gamma2, beta2, inverse=True))
    ref2 = gdn_ref(x2, gamma2, beta2, inverse=True)
    assert out2.shape == x2.shape
    assert jnp.allclose(out2, ref2, atol=5e-3, rtol=5e-3), "MXU path mismatch"

    print("KERNEL_OK")
</pallas_src>

<mosaic_0001>
module attributes {stable_mosaic.version = 11 : i64} {
  func.func @_gdn_vpu_kernel(%arg0: i32, %arg1: i32, %arg2: memref<1x4x2x128xf32, #tpu.memory_space<vmem>>, %arg3: memref<4x4xf32, #tpu.memory_space<smem>>, %arg4: memref<4xf32, #tpu.memory_space<smem>>, %arg5: memref<1x4x2x128xf32, #tpu.memory_space<vmem>>) attributes {dimension_semantics = [#tpu.dimension_semantics<parallel>, #tpu.dimension_semantics<parallel>], iteration_bounds = array<i64: 1, 2>, scalar_prefetch = 0 : i64, scratch_operands = 0 : i64, tpu.core_type = #tpu.core_type<tc>, window_params = [{transform_indices = @transform_0, window_bounds = array<i64: 1, 4, 2, 128>}, {transform_indices = @transform_1, window_bounds = array<i64: 4, 4>}, {transform_indices = @transform_2, window_bounds = array<i64: 4>}, {transform_indices = @transform_3, window_bounds = array<i64: 1, 4, 2, 128>}]} {
    %c0 = arith.constant 0 : index
    %c0_0 = arith.constant 0 : index
    %c0_1 = arith.constant 0 : index
    %c0_2 = arith.constant 0 : index
    %0 = vector.load %arg2[%c0, %c0_0, %c0_1, %c0_2] : memref<1x4x2x128xf32, #tpu.memory_space<vmem>>, vector<1x4x2x128xf32>
    %1 = vector.shape_cast %0 : vector<1x4x2x128xf32> to vector<4x2x128xf32>
    %2 = arith.mulf %1, %1 : vector<4x2x128xf32>
    %c0_3 = arith.constant 0 : index
    %c0_4 = arith.constant 0 : index
    %3 = memref.load %arg3[%c0_3, %c0_4] : memref<4x4xf32, #tpu.memory_space<smem>>
    %4 = vector.extract_strided_slice %2 {offsets = [0, 0, 0], sizes = [1, 2, 128], strides = [1, 1, 1]} : vector<4x2x128xf32> to vector<1x2x128xf32>
    %5 = vector.shape_cast %4 : vector<1x2x128xf32> to vector<2x128xf32>
    %6 = vector.broadcast %3 : f32 to vector<2x128xf32>
    %7 = arith.mulf %6, %5 : vector<2x128xf32>
    %c0_5 = arith.constant 0 : index
    %c1 = arith.constant 1 : index
    %8 = memref.load %arg3[%c0_5, %c1] : memref<4x4xf32, #tpu.memory_space<smem>>
    %9 = vector.extract_strided_slice %2 {offsets = [1, 0, 0], sizes = [1, 2, 128], strides = [1, 1, 1]} : vector<4x2x128xf32> to vector<1x2x128xf32>
    %10 = vector.shape_cast %9 : vector<1x2x128xf32> to vector<2x128xf32>
    %11 = vector.broadcast %8 : f32 to vector<2x128xf32>
    %12 = arith.mulf %11, %10 : vector<2x128xf32>
    %13 = arith.addf %7, %12 : vector<2x128xf32>
    %c0_6 = arith.constant 0 : index
    %c2 = arith.constant 2 : index
    %14 = memref.load %arg3[%c0_6, %c2] : memref<4x4xf32, #tpu.memory_space<smem>>
    %15 = vector.extract_strided_slice %2 {offsets = [2, 0, 0], sizes = [1, 2, 128], strides = [1, 1, 1]} : vector<4x2x128xf32> to vector<1x2x128xf32>
    %16 = vector.shape_cast %15 : vector<1x2x128xf32> to vector<2x128xf32>
    %17 = vector.broadcast %14 : f32 to vector<2x128xf32>
    %18 = arith.mulf %17, %16 : vector<2x128xf32>
    %19 = arith.addf %13, %18 : vector<2x128xf32>
    %c0_7 = arith.constant 0 : index
    %c3 = arith.constant 3 : index
    %20 = memref.load %arg3[%c0_7, %c3] : memref<4x4xf32, #tpu.memory_space<smem>>
    %21 = vector.extract_strided_slice %2 {offsets = [3, 0, 0], sizes = [1, 2, 128], strides = [1, 1, 1]} : vector<4x2x128xf32> to vector<1x2x128xf32>
    %22 = vector.shape_cast %21 : vector<1x2x128xf32> to vector<2x128xf32>
    %23 = vector.broadcast %20 : f32 to vector<2x128xf32>
    %24 = arith.mulf %23, %22 : vector<2x128xf32>
    %25 = arith.addf %19, %24 : vector<2x128xf32>
    %c0_8 = arith.constant 0 : index
    %26 = memref.load %arg4[%c0_8] : memref<4xf32, #tpu.memory_space<smem>>
    %27 = vector.broadcast %26 : f32 to vector<2x128xf32>
    %28 = arith.addf %25, %27 : vector<2x128xf32>
    %29 = math.rsqrt %28 : vector<2x128xf32>
    %30 = vector.extract_strided_slice %1 {offsets = [0, 0, 0], sizes = [1, 2, 128], strides = [1, 1, 1]} : vector<4x2x128xf32> to vector<1x2x128xf32>
    %31 = vector.shape_cast %30 : vector<1x2x128xf32> to vector<2x128xf32>
    %32 = arith.mulf %31, %29 : vector<2x128xf32>
    %c0_9 = arith.constant 0 : index
    %c0_10 = arith.constant 0 : index
    %c0_11 = arith.constant 0 : index
    %c0_12 = arith.constant 0 : index
    %33 = vector.load %arg5[%c0_9, %c0_10, %c0_11, %c0_12] : memref<1x4x2x128xf32, #tpu.memory_space<vmem>>, vector<1x1x2x128xf32>
    %34 = vector.shape_cast %33 : vector<1x1x2x128xf32> to vector<2x128xf32>
    %35 = vector.shape_cast %32 : vector<2x128xf32> to vector<1x1x2x128xf32>
    tpu.vector_store %arg5[%c0_9, %c0_10, %c0_11, %c0_12], %35 {strides = array<i32>} : memref<1x4x2x128xf32, #tpu.memory_space<vmem>>, vector<1x1x2x128xf32>,
    %c1_13 = arith.constant 1 : index
    %c0_14 = arith.constant 0 : index
    %36 = memref.load %arg3[%c1_13, %c0_14] : memref<4x4xf32, #tpu.memory_space<smem>>
    %37 = vector.extract_strided_slice %2 {offsets = [0, 0, 0], sizes = [1, 2, 128], strides = [1, 1, 1]} : vector<4x2x128xf32> to vector<1x2x128xf32>
    %38 = vector.shape_cast %37 : vector<1x2x128xf32> to vector<2x128xf32>
    %39 = vector.broadcast %36 : f32 to vector<2x128xf32>
    %40 = arith.mulf %39, %38 : vector<2x128xf32>
    %c1_15 = arith.constant 1 : index
    %c1_16 = arith.constant 1 : index
    %41 = memref.load %arg3[%c1_15, %c1_16] : memref<4x4xf32, #tpu.memory_space<smem>>
    %42 = vector.extract_strided_slice %2 {offsets = [1, 0, 0], sizes = [1, 2, 128], strides = [1, 1, 1]} : vector<4x2x128xf32> to vector<1x2x128xf32>
    %43 = vector.shape_cast %42 : vector<1x2x128xf32> to vector<2x128xf32>
    %44 = vector.broadcast %41 : f32 to vector<2x128xf32>
    %45 = arith.mulf %44, %43 : vector<2x128xf32>
    %46 = arith.addf %40, %45 : vector<2x128xf32>
    %c1_17 = arith.constant 1 : index
    %c2_18 = arith.constant 2 : index
    %47 = memref.load %arg3[%c1_17, %c2_18] : memref<4x4xf32, #tpu.memory_space<smem>>
    %48 = vector.extract_strided_slice %2 {offsets = [2, 0, 0], sizes = [1, 2, 128], strides = [1, 1, 1]} : vector<4x2x128xf32> to vector<1x2x128xf32>
    %49 = vector.shape_cast %48 : vector<1x2x128xf32> to vector<2x128xf32>
    %50 = vector.broadcast %47 : f32 to vector<2x128xf32>
    %51 = arith.mulf %50, %49 : vector<2x128xf32>
    %52 = arith.addf %46, %51 : vector<2x128xf32>
    %c1_19 = arith.constant 1 : index
    %c3_20 = arith.constant 3 : index
    %53 = memref.load %arg3[%c1_19, %c3_20] : memref<4x4xf32, #tpu.memory_space<smem>>
    %54 = vector.extract_strided_slice %2 {offsets = [3, 0, 0], sizes = [1, 2, 128], strides = [1, 1, 1]} : vector<4x2x128xf32> to vector<1x2x128xf32>
    %55 = vector.shape_cast %54 : vector<1x2x128xf32> to vector<2x128xf32>
    %56 = vector.broadcast %53 : f32 to vector<2x128xf32>
    %57 = arith.mulf %56, %55 : vector<2x128xf32>
    %58 = arith.addf %52, %57 : vector<2x128xf32>
    %c1_21 = arith.constant 1 : index
    %59 = memref.load %arg4[%c1_21] : memref<4xf32, #tpu.memory_space<smem>>
    %60 = vector.broadcast %59 : f32 to vector<2x128xf32>
    %61 = arith.addf %58, %60 : vector<2x128xf32>
    %62 = math.rsqrt %61 : vector<2x128xf32>
    %63 = vector.extract_strided_slice %1 {offsets = [1, 0, 0], sizes = [1, 2, 128], strides = [1, 1, 1]} : vector<4x2x128xf32> to vector<1x2x128xf32>
    %64 = vector.shape_cast %63 : vector<1x2x128xf32> to vector<2x128xf32>
    %65 = arith.mulf %64, %62 : vector<2x128xf32>
    %c0_22 = arith.constant 0 : index
    %c1_23 = arith.constant 1 : index
    %c0_24 = arith.constant 0 : index
    %c0_25 = arith.constant 0 : index
    %66 = vector.load %arg5[%c0_22, %c1_23, %c0_24, %c0_25] : memref<1x4x2x128xf32, #tpu.memory_space<vmem>>, vector<1x1x2x128xf32>
    %67 = vector.shape_cast %66 : vector<1x1x2x128xf32> to vector<2x128xf32>
    %68 = vector.shape_cast %65 : vector<2x128xf32> to vector<1x1x2x128xf32>
    tpu.vector_store %arg5[%c0_22, %c1_23, %c0_24, %c0_25], %68 {strides = array<i32>} : memref<1x4x2x128xf32, #tpu.memory_space<vmem>>, vector<1x1x2x128xf32>,
    %c2_26 = arith.constant 2 : index
    %c0_27 = arith.constant 0 : index
    %69 = memref.load %arg3[%c2_26, %c0_27] : memref<4x4xf32, #tpu.memory_space<smem>>
    %70 = vector.extract_strided_slice %2 {offsets = [0, 0, 0], sizes = [1, 2, 128], strides = [1, 1, 1]} : vector<4x2x128xf32> to vector<1x2x128xf32>
    %71 = vector.shape_cast %70 : vector<1x2x128xf32> to vector<2x128xf32>
    %72 = vector.broadcast %69 : f32 to vector<2x128xf32>
    %73 = arith.mulf %72, %71 : vector<2x128xf32>
    %c2_28 = arith.constant 2 : index
    %c1_29 = arith.constant 1 : index
    %74 = memref.load %arg3[%c2_28, %c1_29] : memref<4x4xf32, #tpu.memory_space<smem>>
    %75 = vector.extract_strided_slice %2 {offsets = [1, 0, 0], sizes = [1, 2, 128], strides = [1, 1, 1]} : vector<4x2x128xf32> to vector<1x2x128xf32>
    %76 = vector.shape_cast %75 : vector<1x2x128xf32> to vector<2x128xf32>
    %77 = vector.broadcast %74 : f32 to vector<2x128xf32>
    %78 = arith.mulf %77, %76 : vector<2x128xf32>
    %79 = arith.addf %73, %78 : vector<2x128xf32>
    %c2_30 = arith.constant 2 : index
    %c2_31 = arith.constant 2 : index
    %80 = memref.load %arg3[%c2_30, %c2_31] : memref<4x4xf32, #tpu.memory_space<smem>>
    %81 = vector.extract_strided_slice %2 {offsets = [2, 0, 0], sizes = [1, 2, 128], strides = [1, 1, 1]} : vector<4x2x128xf32> to vector<1x2x128xf32>
    %82 = vector.shape_cast %81 : vector<1x2x128xf32> to vector<2x128xf32>
    %83 = vector.broadcast %80 : f32 to vector<2x128xf32>
    %84 = arith.mulf %83, %82 : vector<2x128xf32>
    %85 = arith.addf %79, %84 : vector<2x128xf32>
    %c2_32 = arith.constant 2 : index
    %c3_33 = arith.constant 3 : index
    %86 = memref.load %arg3[%c2_32, %c3_33] : memref<4x4xf32, #tpu.memory_space<smem>>
    %87 = vector.extract_strided_slice %2 {offsets = [3, 0, 0], sizes = [1, 2, 128], strides = [1, 1, 1]} : vector<4x2x128xf32> to vector<1x2x128xf32>
    %88 = vector.shape_cast %87 : vector<1x2x128xf32> to vector<2x128xf32>
    %89 = vector.broadcast %86 : f32 to vector<2x128xf32>
    %90 = arith.mulf %89, %88 : vector<2x128xf32>
    %91 = arith.addf %85, %90 : vector<2x128xf32>
    %c2_34 = arith.constant 2 : index
    %92 = memref.load %arg4[%c2_34] : memref<4xf32, #tpu.memory_space<smem>>
    %93 = vector.broadcast %92 : f32 to vector<2x128xf32>
    %94 = arith.addf %91, %93 : vector<2x128xf32>
    %95 = math.rsqrt %94 : vector<2x128xf32>
    %96 = vector.extract_strided_slice %1 {offsets = [2, 0, 0], sizes = [1, 2, 128], strides = [1, 1, 1]} : vector<4x2x128xf32> to vector<1x2x128xf32>
    %97 = vector.shape_cast %96 : vector<1x2x128xf32> to vector<2x128xf32>
    %98 = arith.mulf %97, %95 : vector<2x128xf32>
    %c0_35 = arith.constant 0 : index
    %c2_36 = arith.constant 2 : index
    %c0_37 = arith.constant 0 : index
    %c0_38 = arith.constant 0 : index
    %99 = vector.load %arg5[%c0_35, %c2_36, %c0_37, %c0_38] : memref<1x4x2x128xf32, #tpu.memory_space<vmem>>, vector<1x1x2x128xf32>
    %100 = vector.shape_cast %99 : vector<1x1x2x128xf32> to vector<2x128xf32>
    %101 = vector.shape_cast %98 : vector<2x128xf32> to vector<1x1x2x128xf32>
    tpu.vector_store %arg5[%c0_35, %c2_36, %c0_37, %c0_38], %101 {strides = array<i32>} : memref<1x4x2x128xf32, #tpu.memory_space<vmem>>, vector<1x1x2x128xf32>,
    %c3_39 = arith.constant 3 : index
    %c0_40 = arith.constant 0 : index
    %102 = memref.load %arg3[%c3_39, %c0_40] : memref<4x4xf32, #tpu.memory_space<smem>>
    %103 = vector.extract_strided_slice %2 {offsets = [0, 0, 0], sizes = [1, 2, 128], strides = [1, 1, 1]} : vector<4x2x128xf32> to vector<1x2x128xf32>
    %104 = vector.shape_cast %103 : vector<1x2x128xf32> to vector<2x128xf32>
    %105 = vector.broadcast %102 : f32 to vector<2x128xf32>
    %106 = arith.mulf %105, %104 : vector<2x128xf32>
    %c3_41 = arith.constant 3 : index
    %c1_42 = arith.constant 1 : index
    %107 = memref.load %arg3[%c3_41, %c1_42] : memref<4x4xf32, #tpu.memory_space<smem>>
    %108 = vector.extract_strided_slice %2 {offsets = [1, 0, 0], sizes = [1, 2, 128], strides = [1, 1, 1]} : vector<4x2x128xf32> to vector<1x2x128xf32>
    %109 = vector.shape_cast %108 : vector<1x2x128xf32> to vector<2x128xf32>
    %110 = vector.broadcast %107 : f32 to vector<2x128xf32>
    %111 = arith.mulf %110, %109 : vector<2x128xf32>
    %112 = arith.addf %106, %111 : vector<2x128xf32>
    %c3_43 = arith.constant 3 : index
    %c2_44 = arith.constant 2 : index
    %113 = memref.load %arg3[%c3_43, %c2_44] : memref<4x4xf32, #tpu.memory_space<smem>>
    %114 = vector.extract_strided_slice %2 {offsets = [2, 0, 0], sizes = [1, 2, 128], strides = [1, 1, 1]} : vector<4x2x128xf32> to vector<1x2x128xf32>
    %115 = vector.shape_cast %114 : vector<1x2x128xf32> to vector<2x128xf32>
    %116 = vector.broadcast %113 : f32 to vector<2x128xf32>
    %117 = arith.mulf %116, %115 : vector<2x128xf32>
    %118 = arith.addf %112, %117 : vector<2x128xf32>
    %c3_45 = arith.constant 3 : index
    %c3_46 = arith.constant 3 : index
    %119 = memref.load %arg3[%c3_45, %c3_46] : memref<4x4xf32, #tpu.memory_space<smem>>
    %120 = vector.extract_strided_slice %2 {offsets = [3, 0, 0], sizes = [1, 2, 128], strides = [1, 1, 1]} : vector<4x2x128xf32> to vector<1x2x128xf32>
    %121 = vector.shape_cast %120 : vector<1x2x128xf32> to vector<2x128xf32>
    %122 = vector.broadcast %119 : f32 to vector<2x128xf32>
    %123 = arith.mulf %122, %121 : vector<2x128xf32>
    %124 = arith.addf %118, %123 : vector<2x128xf32>
    %c3_47 = arith.constant 3 : index
    %125 = memref.load %arg4[%c3_47] : memref<4xf32, #tpu.memory_space<smem>>
    %126 = vector.broadcast %125 : f32 to vector<2x128xf32>
    %127 = arith.addf %124, %126 : vector<2x128xf32>
    %128 = math.rsqrt %127 : vector<2x128xf32>
    %129 = vector.extract_strided_slice %1 {offsets = [3, 0, 0], sizes = [1, 2, 128], strides = [1, 1, 1]} : vector<4x2x128xf32> to vector<1x2x128xf32>
    %130 = vector.shape_cast %129 : vector<1x2x128xf32> to vector<2x128xf32>
    %131 = arith.mulf %130, %128 : vector<2x128xf32>
    %c0_48 = arith.constant 0 : index
    %c3_49 = arith.constant 3 : index
    %c0_50 = arith.constant 0 : index
    %c0_51 = arith.constant 0 : index
    %132 = vector.load %arg5[%c0_48, %c3_49, %c0_50, %c0_51] : memref<1x4x2x128xf32, #tpu.memory_space<vmem>>, vector<1x1x2x128xf32>
    %133 = vector.shape_cast %132 : vector<1x1x2x128xf32> to vector<2x128xf32>
    %134 = vector.shape_cast %131 : vector<2x128xf32> to vector<1x1x2x128xf32>
    tpu.vector_store %arg5[%c0_48, %c3_49, %c0_50, %c0_51], %134 {strides = array<i32>} : memref<1x4x2x128xf32, #tpu.memory_space<vmem>>, vector<1x1x2x128xf32>,
    return
  }
  func.func @transform_0(%arg0: i32, %arg1: i32) -> (i32, i32, i32, i32) {
    %c0_i32 = arith.constant 0 : i32
    %c0_i32_0 = arith.constant 0 : i32
    %c0_i32_1 = arith.constant 0 : i32
    return %arg1, %c0_i32, %arg0, %c0_i32_0 : i32, i32, i32, i32
  }
  func.func @transform_1(%arg0: i32, %arg1: i32) -> (i32, i32) {
    %c0_i32 = arith.constant 0 : i32
    %c0_i32_0 = arith.constant 0 : i32
    %c0_i32_1 = arith.constant 0 : i32
    return %c0_i32, %c0_i32_0 : i32, i32
  }
  func.func @transform_2(%arg0: i32, %arg1: i32) -> i32 {
    %c0_i32 = arith.constant 0 : i32
    %c0_i32_0 = arith.constant 0 : i32
    return %c0_i32 : i32
  }
  func.func @transform_3(%arg0: i32, %arg1: i32) -> (i32, i32, i32, i32) {
    %c0_i32 = arith.constant 0 : i32
    %c0_i32_0 = arith.constant 0 : i32
    %c0_i32_1 = arith.constant 0 : i32
    return %arg1, %c0_i32, %arg0, %c0_i32_0 : i32, i32, i32, i32
  }
}

</mosaic_0001>

<bundles_post_ra>
// kernel: tpu_custom_call.1
= control target key start
LH: loop header
LB: loop body
LE: loop exit
PB: predicated region body
PF: predicated region fallthrough
CT: control target
= control target key end

     0   :  { %8 = vsyncpa [#allocation3], 0  ;;  %s1050_s0 = inlined_call_operand.hbm [shape: f32[2,4,2,128], index: 0, kind: input, shape index: {}]   ;;  %s1051_s1 = inlined_call_operand.hbm [shape: f32[4,4], index: 1, kind: input, shape index: {}]   ;;  %s1052_s2 = inlined_call_operand.vmem [shape: f32[4], index: 2, kind: input, shape index: {}]   ;;  %s1053_s3 = inlined_call_operand.hbm [shape: f32[2,4,2,128], index: 3, kind: output, shape index: {}]  }
   0x1   :  { %10 = vsyncpa [#allocation3 + $0x1], 0 }
   0x2   :  { %11 = vsyncpa [#allocation5], 0 }
   0x3   :  { %12 = vsyncpa [#allocation6], 0 }
   0x4   :  { %13 = vsyncpa [#allocation4], 0 }
   0x5   :  { %15 = vsyncpa [#allocation4 + $0x1], 0  ;;  %s765_s12 = smov 0   ;;  %s767_s13 = smov 0  }
   0x6   :  { %s769_s14 = smov 0   ;;  %s771_s15 = smov 0  }
   0x7   :  { %s773_s16 = smov 0   ;;  %s775_s17 = smov 0  }
   0x8 LB: > { %s450_s18 = sadd.s32 4294967295, %s735_s17   ;;  %s451_s19 = sadd.s32 4294967294, %s735_s17   ;;  %s735_s17 = sphi %s775_s17, %s21_s17   ;;  %s731_s16 = sphi %s773_s16, %s1076_s16   ;;  %s727_s15 = sphi %s771_s15, %s1075_s15   ;;  %s723_s14 = sphi %s769_s14, %s1074_s14   ;;  %s719_s13 = sphi %s767_s13, %s1073_s13   ;;  %s715_s12 = sphi %s765_s12, %s1072_s12  }
   0x9   : > { %s42_s20 = sadd.s32 1, %s723_s14  ;;  %p49_p0 = scmp.ne.s32.totalorder %s723_s14, %s719_s13 }
   0xa   : > { %p50_p1 = scmp.eq.s32.totalorder %s735_s17, 0  ;;  %p55_p2 = scmp.ne.s32.totalorder %s719_s13, %s715_s12 }
   0xb   : > { %p803_p3 = scmp.eq.s32.totalorder %s450_s18, 0  ;;  %p123_p4 = scmp.eq.s32.totalorder %s450_s18, 1 }
   0xc   : > { %p51_p5 = por %p50_p1, %p49_p0  ;;  %p129_p6 = scmp.eq.s32.totalorder %s451_s19, 1 }
   0xd   : > { %s1059_s21 = scalar_select %p803_p3, 1, 0 }
   0xe   : > { %p809_p7 = por %p803_p3, %p55_p2  ;;  %p813_p8 = por %p123_p4, %p49_p0 }
   0xf   : > { %p817_p9 = por %p129_p6, %p55_p2  ;;  %p452_p10 = scmp.ge.s32.totalorder %s735_s17, 1 }
  0x10   : > { %s1060_s22 = scalar_select %p809_p7, 1, 0 }
  0x11   : > { %s1061_s23 = scalar_select %p813_p8, 1, 0 }
  0x12   : > { %s1062_s24 = scalar_select %p817_p9, 1, 0 }
  0x13   : > { %p136_p11 = scmp.lt.s32.totalorder %s735_s17, 3  ;;  %p521_p1 = scmp.lt.s32.totalorder %s735_s17, 2 }
  0x14   : > { %s158_s28 = sshll.u32 %s1052_s2, 4  ;;  %s169_s4 = sand.u32 1, %s723_s14   ;;  %s159_s28 = int_to_ptr.vmem [resolvable:$true] %s158_s28 }
  0x15   : > { %p824_p13 = pnand %p452_p10, %p136_p11  ;;  %p834_p4 = pnand %p521_p1, %p51_p5 }
  0x16   : > { %s30_s5 = sadd.s32 1, %s731_s16  ;;  %s587_s8 = scalar_lea.hbm %s1051_s1, 64 }
  0x17   : > { %p504_p0 = pneg %p824_p13  ;;  %p588_p5 = scmp.ne.s32.totalorder %s1051_s1, %s587_s8 }
  0x18   : > { %p594_p1 = scmp.lt.u32.totalorder %s587_s8, %s1051_s1 }
  0x19   : > { %p840_p2 = pnand %p504_p0, %p803_p3 }
  0x1b   : > { %p589_p6 = pneg %p840_p2 }
  0x1d   : > { %p590_p10 = pnand %p589_p6, %p588_p5 }
  0x1f   : > { %p591_p11 = pneg %p590_p10 }
  0x21   : > { %p596_p0 = pnand %p594_p1, %p591_p11 }
  0x23   : > { %599 = shalt.err (!%p596_p0)
}
  0x24   : > { %s737_s19 = smov [#allocation7]   ;;  %s600_s6 = scalar_lea.vmem %s159_s28, 16 }
  0x25   : > { %507 = dma.hbm_to_smem (!%p840_p2), %s1051_s1, 64, %s737_s19, [#allocation5]  }
  0x26   : > { %p601_p12 = scmp.ne.s32.totalorder %s159_s28, %s600_s6  ;;  %p608_p3 = scmp.lt.s32.totalorder %s159_s28, %s159_s28 }
  0x27   : > { %p609_p5 = scmp.lt.s32.totalorder %s600_s6, %s600_s6 }
  0x28   : > { %p603_p9 = pnand %p601_p12, %p589_p6 }
  0x29   : > { %p610_p10 = por %p609_p5, %p608_p3 }
  0x2a   : > { %p604_p8 = pneg %p603_p9 }
  0x2c   : > { %p611_p7 = pnand %p610_p10, %p604_p8 }
  0x2e   : > { %614 = shalt.err (!%p611_p7)
}
  0x2f   : > { %s738_s7 = smov [#allocation8]   ;;  %p31_p11 = scmp.ge.s32.totalorder %s30_s5, 2 }
  0x30   : > { %510 = dma.vmem_to_smem (!%p840_p2), %s159_s28, 16, %s738_s7, [#allocation6]  }
  0x31   : > { %s456_s8 = sshll.u32 %s169_s4, 3  ;;  %s490_s9 = sshll.u32 %s731_s16, 7 }
  0x32   : > { %s1078_s5 = smov (%p31_p11, %s30_s5), 0  ;;  %s872_s30 = scalar_lea.hbm %s1050_s0, %s490_s9 }
  0x33   : > { %s37_s18 = ssub.s32 %s731_s16, %s1078_s5  ;;  %s173_s19 = scalar_lea.vmem [#allocation2], %s456_s8 }
  0x34   : > { %s181_s28 = sshll.u32 %s173_s19, 4  ;;  %p40_p3 = scmp.eq.s32.totalorder %s37_s18, 0  ;;  %s876_s28 = int_to_ptr.vmem [resolvable:$true] %s181_s28 }
  0x35   : > { %s885_s27 = scalar_lea.sflag [#allocation3], %s169_s4  ;;  %s615_s6 = scalar_lea.hbm %s872_s30, 128 }
  0x36   : > { %s881_s26 = scalar_select %p40_p3, %s723_s14, %s42_s20  }
  0x37   : > { %p616_p7 = scmp.ne.s32.totalorder %s872_s30, %s615_s6  ;;  %p617_p8 = pneg %p834_p4 }
  0x38   : > { %s620_s9 = scalar_lea.hbm %s1050_s0, 256  ;;  %p621_p2 = scmp.lt.u32.totalorder %s872_s30, %s1050_s0 }
  0x39   : > { %p618_p9 = pnand %p617_p8, %p616_p7  ;;  %p622_p6 = scmp.lt.u32.totalorder %s620_s9, %s615_s6 }
  0x3a   : > { %p624_p0 = scmp.lt.u32.totalorder %s615_s6, %s872_s30 }
  0x3b   : > { %p619_p12 = pneg %p618_p9  ;;  %p623_p1 = por %p622_p6, %p621_p2 }
  0x3d   : > { %p625_p5 = por %p624_p0, %p623_p1 }
  0x3f   : > { %p626_p10 = pnand %p625_p5, %p619_p12 }
  0x41   : > { %629 = shalt.err (!%p626_p10)
}
  0x42   : > { %s630_s20 = scalar_lea.vmem %s876_s28, 128  ;;  %s739_s4 = smov [#allocation2]  }
  0x43   : > { %p631_p11 = scmp.ne.s32.totalorder %s876_s28, %s630_s20  ;;  %s635_s18 = sshll.u32 %s739_s4, 4  ;;  %s636_s18 = int_to_ptr.vmem [resolvable:$false] %s635_s18 }
  0x44   : > { %s637_s19 = scalar_lea.vmem %s636_s18, 256  ;;  %p638_p9 = scmp.lt.s32.totalorder %s876_s28, %s636_s18 }
  0x45   : > { %p633_p3 = pnand %p631_p11, %p617_p8  ;;  %p639_p2 = scmp.lt.s32.totalorder %s637_s19, %s630_s20 }
  0x47   : > { %p634_p7 = pneg %p633_p3  ;;  %p640_p6 = por %p639_p2, %p638_p9 }
  0x49   : > { %p641_p1 = pnand %p640_p6, %p634_p7 }
  0x4b   : > { %644 = shalt.err (!%p641_p1)
}
  0x4c   : > { %s740_s6 = smov 32   ;;  %s741_s7 = smov 2  }
  0x4d   : > { %514 = dma.hbm_to_vmem [thread:$0]  (!%p834_p4), %s872_s30, 128, %s876_s28, %s885_s27, %s740_s6, %s740_s6, %s741_s7  }
  0x4e   : > { %193 = sbr.rel (%p824_p13) target bundleno = 145 (0x91), region = 32  ;;  %s916_s8 = sand.u32 (!%p824_p13), 1, %s719_s13  }
  0x4f   : > { %s1058_s9 = sshll.u32 (!%p824_p13), %s916_s8, 3  ;;  %s196_s10 = scalar_lea.sflag (!%p824_p13), [#allocation3], %s916_s8 }
  0x50   : > { %s199_s11 = scalar_lea.vmem (!%p824_p13), [#allocation2], %s1058_s9  ;;  %p1066_p8 = scmp.ne.s32.totalorder (!%p824_p13), %s1060_s22, 0 }
  0x55   : > { %698 = dma.done.wait (%p1066_p8), %s196_s10, 128  }
  0x56   : > { %700 = vsyncadd (%p1066_p8), %s196_s10, 4294967168  ;;  %p1067_p4 = scmp.ne.s32.totalorder %s1059_s21, 0 }
  0x58   : > { %702 = dma.done.wait (%p1067_p4), [#allocation5], 64  }
  0x59   : > { %704 = vsyncadd (%p1067_p4), [#allocation5], 4294967232 }
  0x5a   : > { %706 = dma.done.wait (%p1067_p4), [#allocation6], 16  }
  0x5b   : > { %708 = vsyncadd (%p1067_p4), [#allocation6], 4294967280 }
  0x5c   : > { %212 = sfence }
  0x5d   : > { %v934_v0 = vld [vmem:[%s199_s11] sm:$0x3]  ;;  %v936_v1 = vld [vmem:[%s199_s11 + $0x2] sm:$0x3]  ;;  %s239_s25 = sld [smem:[#allocation7]]  ;;  %s464_s22 = sld [smem:[#allocation7 + $0x1]] }
  0x5e   : > { %v938_v2 = vld [vmem:[%s199_s11 + $0x4] sm:$0x3]  ;;  %s465_s29 = sld [smem:[#allocation7 + $0x2]]  ;;  %v940_v3 = vld [vmem:[%s199_s11 + $0x6] sm:$0x3]  ;;  %s466_s30 = sld [smem:[#allocation7 + $0x3]]  ;;  %v235_v4 = vmul.f32 %v934_v0, %v934_v0  ;;  %v236_v5 = vmul.f32 %v936_v1, %v936_v1 }
  0x5f   : > { %s942_s28 = sld [smem:[#allocation8]]  ;;  %s468_s27 = sld [smem:[#allocation7 + $0x81]]  ;;  %v237_v6 = vmul.f32 %v938_v2, %v938_v2  ;;  %v238_v7 = vmul.f32 %v940_v3, %v940_v3 }
  0x60   : > { %s467_s21 = sld [smem:[#allocation7 + $0x80]]  ;;  %s469_s20 = sld [smem:[#allocation7 + $0x82]] }
  0x61   : > { %s950_s4 = sld [smem:[#allocation7 + $0x100]]  ;;  %s954_s18 = sld [smem:[#allocation7 + $0x101]] }
  0x62   : > { %s956_s19 = sld [smem:[#allocation7 + $0x102]]  ;;  %s958_s6 = sld [smem:[#allocation7 + $0x180]] }
  0x63   : > { %v240_v8 = vstv %s239_s25  ;;  %s960_s7 = sld [smem:[#allocation7 + $0x181]]  ;;  %v243_v10 = vstv %s464_s22  ;;  %s962_s10 = sld [smem:[#allocation7 + $0x182]] }
  0x64   : > { %v241_v9 = vmul.f32 %v240_v8, %v235_v4  ;;  %v247_v11 = vstv %s465_s29  ;;  %v244_v12 = vmul.f32 %v243_v10, %v236_v5  ;;  %v251_v14 = vstv %s466_s30  ;;  %s964_s11 = sld [smem:[#allocation7 + $0x83]]  ;;  %s967_s25 = sld [smem:[#allocation8 + $0x1]] }
  0x65   : > { %v248_v13 = vmul.f32 %v247_v11, %v237_v6  ;;  %v252_v15 = vmul.f32 %v251_v14, %v238_v7  ;;  %v255_v16 = vstv %s942_s28  ;;  %v264_v18 = vstv %s468_s27  ;;  %s969_s9 = sld [smem:[#allocation7 + $0x103]]  ;;  %s971_s22 = sld [smem:[#allocation8 + $0x2]] }
  0x66   : > { %v261_v17 = vstv %s467_s21  ;;  %v245_v19 = vadd.f32 %v244_v12, %v241_v9  ;;  %v265_v21 = vmul.f32 %v264_v18, %v236_v5  ;;  %v268_v22 = vstv %s469_s20  ;;  %s973_s29 = sld [smem:[#allocation7 + $0x183]]  ;;  %s491_s27 = sshll.u32 %s727_s15, 7 }
  0x67   : > { %v262_v20 = vmul.f32 %v261_v17, %v235_v4  ;;  %v269_v23 = vmul.f32 %v268_v22, %v237_v6  ;;  %v283_v24 = vstv %s950_s4  ;;  %v286_v25 = vstv %s954_s18  ;;  %s978_s30 = sld [smem:[#allocation8 + $0x3]]  ;;  %s1000_s18 = scalar_lea.hbm %s1053_s3, %s491_s27 }
  0x68   : > { %v290_v26 = vstv %s956_s19  ;;  %v249_v27 = vadd.f32 %v248_v13, %v245_v19  ;;  %v284_v29 = vmul.f32 %v283_v24, %v235_v4  ;;  %v287_v30 = vmul.f32 %v286_v25, %v236_v5  ;;  %s327_s15 = scalar_lea.sflag [#allocation4], %s916_s8  ;;  %p1069_p12 = scmp.ne.s32.totalorder %s1061_s23, 0 }
  0x69   : > { %v266_v28 = vadd.f32 %v265_v21, %v262_v20  ;;  %v291_v31 = vmul.f32 %v290_v26, %v237_v6  ;;  %v305_v32 = vstv %s958_s6  ;;  %v308_v33 = vstv %s960_s7  ;;  %s742_s6 = smov [#allocation9]  }
  0x6a   : > { %v312_v34 = vstv %s962_s10  ;;  %v253_v35 = vadd.f32 %v252_v15, %v249_v27  ;;  %v288_v37 = vadd.f32 %v287_v30, %v284_v29  ;;  %v306_v38 = vmul.f32 %v305_v32, %v235_v4  ;;  %s649_s7 = sshll.u32 %s742_s6, 4  ;;  %s650_s7 = int_to_ptr.vmem [resolvable:$false] %s649_s7 }
  0x6b   : > { %v270_v36 = vadd.f32 %v269_v23, %v266_v28  ;;  %v309_v39 = vmul.f32 %v308_v33, %v236_v5  ;;  %v313_v40 = vmul.f32 %v312_v34, %v237_v6  ;;  %v272_v41 = vstv %s964_s11  ;;  %s651_s10 = scalar_lea.vmem %s650_s7, 256 }
  0x6c   : > { %v256_v42 = vadd.f32 %v255_v16, %v253_v35  ;;  %v292_v43 = vadd.f32 %v291_v31, %v288_v37  ;;  %v273_v44 = vmul.f32 %v272_v41, %v238_v7  ;;  %v294_v45 = vstv %s969_s9  ;;  %s1068_s9 = sshll.u32 %s916_s8, 3 }
  0x6d   : > { %v310_v46 = vadd.f32 %v309_v39, %v306_v38  ;;  %v276_v47 = vstv %s967_s25  ;;  %v295_v48 = vmul.f32 %v294_v45, %v238_v7  ;;  %v316_v49 = vstv %s973_s29  ;;  %s230_s28 = scalar_lea.vmem [#allocation9], %s1068_s9 }
  0x6e   : > { %579 = vrsqrt.f32 %v256_v42  ;;  %v274_v50 = vadd.f32 %v273_v44, %v270_v36  ;;  %v298_v51 = vstv %s971_s22  ;;  %v317_v52 = vmul.f32 %v316_v49, %v238_v7  ;;  %s341_s21 = sshll.u32 %s230_s28, 4  ;;  %s995_s21 = int_to_ptr.vmem [resolvable:$true] %s341_s21 }
  0x6f   : > { %v314_v53 = vadd.f32 %v313_v40, %v310_v46  ;;  %v296_v54 = vadd.f32 %v295_v48, %v292_v43  ;;  %v320_v56 = vstv %s978_s30  ;;  %s645_s19 = scalar_lea.vmem %s995_s21, 128  ;;  %p652_p10 = scmp.lt.s32.totalorder %s995_s21, %s650_s7 }
  0x70   : > { %v277_v55 = vadd.f32 %v276_v47, %v274_v50  ;;  %p646_p13 = scmp.ne.s32.totalorder %s995_s21, %s645_s19  ;;  %p653_p11 = scmp.lt.s32.totalorder %s651_s10, %s645_s19 }
  0x71   : > { %v299_v57 = vadd.f32 %v298_v51, %v296_v54  ;;  %v318_v58 = vadd.f32 %v317_v52, %v314_v53 }
  0x72   : > { %581 = vrsqrt.f32 %v277_v55  ;;  %p647_p0 = pnand %p646_p13, %p1069_p12  ;;  %p654_p3 = por %p653_p11, %p652_p10 }
  0x73   : > { %583 = vrsqrt.f32 %v299_v57  ;;  %v321_v59 = vadd.f32 %v320_v56, %v318_v58 }
  0x74   : > { %p648_p5 = pneg %p647_p0 }
  0x75   : > { %585 = vrsqrt.f32 %v321_v59 }
  0x76   : > { %p655_p7 = pnand %p654_p3, %p648_p5 }
  0x78   : > { %v580_v60 = vpop.eup %579 }
  0x79   : > { %v258_v61 = vmul.f32 %v580_v60, %v934_v0 }
  0x7b   : > { %259 = vst [vmem:[%s230_s28] sm:$0x3] %v258_v61 }
  0x7c   : > { %v582_v62 = vpop.eup %581 }
  0x7d   : > { %v584_v63 = vpop.eup %583  ;;  %v279_v4 = vmul.f32 %v582_v62, %v936_v1 }
  0x7e   : > { %v301_v5 = vmul.f32 %v584_v63, %v938_v2 }
  0x7f   : > { %v586_v6 = vpop.eup %585  ;;  %472 = vst [vmem:[%s230_s28 + $0x2] sm:$0x3] %v279_v4 }
  0x80   : > { %478 = vst [vmem:[%s230_s28 + $0x4] sm:$0x3] %v301_v5  ;;  %v323_v0 = vmul.f32 %v586_v6, %v940_v3 }
  0x82   : > { %484 = vst [vmem:[%s230_s28 + $0x6] sm:$0x3] %v323_v0 }
  0x83   : > { %658 = shalt.err (!%p655_p7)
}
  0x84   : > { %s659_s11 = scalar_lea.hbm %s1000_s18, 128  ;;  %s663_s29 = scalar_lea.hbm %s1053_s3, 256 }
  0x85   : > { %p660_p9 = scmp.ne.s32.totalorder %s1000_s18, %s659_s11  ;;  %p664_p1 = scmp.lt.u32.totalorder %s1000_s18, %s1053_s3 }
  0x86   : > { %p665_p8 = scmp.lt.u32.totalorder %s663_s29, %s659_s11  ;;  %p667_p13 = scmp.lt.u32.totalorder %s659_s11, %s1000_s18 }
  0x87   : > { %p661_p2 = pnand %p660_p9, %p1069_p12 }
  0x88   : > { %p666_p4 = por %p665_p8, %p664_p1 }
  0x89   : > { %p662_p6 = pneg %p661_p2 }
  0x8a   : > { %p668_p0 = por %p667_p13, %p666_p4 }
  0x8c   : > { %p669_p5 = pnand %p668_p0, %p662_p6 }
  0x8e   : > { %672 = shalt.err (!%p669_p5)
}
  0x8f   : > { %s743_s28 = smov 32   ;;  %s744_s27 = smov 2  }
  0x90   : > { %502 = dma.vmem_to_hbm [thread:$0]  (%p1069_p12), %s995_s21, 128, %s1000_s18, %s327_s15, %s743_s28, %s743_s28, %s744_s27  }
  0x91 PF: > { %s356_s20 = sand.u32 1, %s715_s12   ;;  %p1070_p10 = scmp.ne.s32.totalorder %s1062_s24, 0 }
  0x92   : > { %p1071_p11 = scmp.ge.s32.totalorder %s735_s17, 2  ;;  %s357_s4 = scalar_lea.sflag [#allocation4], %s356_s20 }
  0x94   : > { %p516_p3 = pnand %p1071_p11, %p1070_p10 }
  0x96   : > { %710 = dma.done.wait (!%p516_p3), %s357_s4, 128  }
  0x97   : > { %712 = vsyncadd (!%p516_p3), %s357_s4, 4294967168  ;;  %s21_s17 = sadd.s32 1, %s735_s17   ;;  %s1072_s12 = smov %s719_s13 }
  0x98   : > { %p18_p7 = scmp.ge.s32.totalorder %s21_s17, 4   ;;  %s1073_s13 = smov %s723_s14 }
  0x99   : > { %s1074_s14 = smov %s881_s26  ;;  %s1075_s15 = smov %s731_s16 }
  0x9a   : > { %s1076_s16 = smov %s1078_s5  ;;  %20 = sbr.rel (!%p18_p7) target bundleno = 8 (0x8), region = 90 }
  0xa1   :  { %362 = vsyncpa [#allocation3], 1 }
  0xa2   :  { %364 = vsyncpa [#allocation3 + $0x1], 1 }
  0xa3   :  { %365 = vsyncpa [#allocation4], 1 }
  0xa4   :  { %367 = vsyncpa [#allocation4 + $0x1], 1 }
  0xa5   :  { %368 = vsyncpa [#allocation5], 1 }
  0xa6   :  { %370 = vsyncpa [#allocation5 + $0x1], 1 }
  0xa7   :  { %371 = vsyncpa [#allocation6], 1 }
  0xa8   :  { %373 = vsyncpa [#allocation6 + $0x1], 1 }

</bundles_post_ra>
